<compile_context>
chip_gen: v7x
topology: tpu7x:2x2x1
jax: 0.10.0
libtpu: 0.0.40
codegen_flags: <defaults>
</compile_context>

<pallas_src>
import numpy as np
import jax
import jax.numpy as jnp
from jax.experimental import pallas as pl
from jax.experimental.pallas import tpu as pltpu


# --------------------------- host-side weight prep --------------------------- #
def _build_row_toeplitz(w_oihw, w_in, w_out, stride, pad):
    """Per-kernel-row block-Toeplitz matrices for a KHxKW conv on a (.., W*Cin) slab.

    t[di][jin*Cin + cin, j*Cout + c] = w[c, cin, di, dj]  with jin = j*stride + dj - pad.
    Out-of-range jin (horizontal zero padding) simply contributes nothing.
    Row offsets di are handled by the row-window layout fed to the kernel.
    """
    w = np.asarray(w_oihw, dtype=np.float32)
    cout, cin, kh, kw = w.shape
    t = np.zeros((kh, w_in * cin, w_out * cout), dtype=np.float32)
    for di in range(kh):
        for j in range(w_out):
            for dj in range(kw):
                jin = j * stride + dj - pad
                if 0 <= jin < w_in:
                    t[di, jin * cin:(jin + 1) * cin, j * cout:(j + 1) * cout] = \
                        w[:, :, di, dj].T
    return t


# ------------------------------- Pallas kernel ------------------------------- #
def _make_fused_kernel(n_img, h, h2, wc1):
    """Fused layer1 (3x3 s1 p1) + layer2 (3x3 s2 p1) conv+bias+ReLU kernel.

    x1_ref rows are ordered [image][parity][i2] (input row i = 2*i2 + parity), so
    the stride-2 row picks for layer 2 are contiguous slices of the layer-1 result.
    """

    def kernel(x1_ref, t1_ref, t2_ref, b1_ref, b2_ref, o1_ref, o2_ref):
        # ---- layer 1: one MXU matmul over the whole batch
        #      M = N*H, K = 3*W*Cin, N = W*C1; bf16 operands, f32 accumulation.
        f1 = jnp.dot(x1_ref[...], t1_ref[...], preferred_element_type=jnp.float32)
        f1 = jnp.maximum(f1 + b1_ref[...], 0.0)      # single hoisted bias broadcast
        o1_ref[...] = f1                              # lane-dense full-width store

        # ---- layer 2: stride-2 row windows are contiguous slices thanks to the
        #      parity-grouped row order.  Build (h2, 3*W*C1) per image, concat the
        #      batch along M, and run one f32 matmul (M = N*H2, K = 3*W*C1, N = 128).
        zero_row = jnp.zeros((1, wc1), jnp.float32)   # top vertical padding row
        slabs = []
        for n in range(n_img):                        # tiny static loop (N images)
            even = f1[n * h:n * h + h2, :]            # input rows 0,2,...,h-2
            odd = f1[n * h + h2:(n + 1) * h, :]       # input rows 1,3,...,h-1
            # di=0 window: padded rows 0,2,..  = [zero_pad, odd[0:h2-1]]
            w0 = jnp.concatenate([zero_row, odd[:h2 - 1, :]], axis=0)
            # di=1 window = even rows, di=2 window = odd rows; fuse along K.
            slabs.append(jnp.concatenate([w0, even, odd], axis=-1))   # (h2, 3*W*C1)
        x2 = jnp.concatenate(slabs, axis=0)                            # (N*h2, 3*W*C1)
        f2 = jnp.dot(x2, t2_ref[...], preferred_element_type=jnp.float32)
        o2_ref[...] = jnp.maximum(f2 + b2_ref[...], 0.0)

    return kernel


# ------------------------------- forward wrapper ------------------------------ #
def _fused_two_layer_forward(x_nchw, t1cat, t2cat, b1row, b2row):
    n, cin, h, w = x_nchw.shape
    assert h % 2 == 0, "parity-grouped row layout assumes even H"
    h2 = (h - 1) // 2 + 1                    # 3x3, stride 2, pad 1
    w2 = (w - 1) // 2 + 1
    c1 = t1cat.shape[1] // w
    c2 = t2cat.shape[1] // w2
    k1 = 3 * w * cin

    # NHWC internally (channels on lanes).  Vertical zero-pad + 3-row window concat
    # happens HERE, so the kernel has no memset / scatter / scratch at all.
    x_nhwc = jnp.transpose(x_nchw, (0, 2, 3, 1))
    xpad = jnp.pad(x_nhwc, ((0, 0), (1, 1), (0, 0), (0, 0))).reshape(n, h + 2, w * cin)
    wins = jnp.concatenate([xpad[:, di:di + h, :] for di in range(3)], axis=-1)
    # parity-grouped rows: [n][parity][i2] with input row i = 2*i2 + parity
    x1 = (wins.reshape(n, h2, 2, k1)
              .transpose(0, 2, 1, 3)
              .reshape(n * h, k1)
              .astype(jnp.bfloat16))

    kernel = _make_fused_kernel(n, h, h2, w * c1)

    out1, out2 = pl.pallas_call(
        kernel,
        out_shape=(
            jax.ShapeDtypeStruct((n * h, w * c1), jnp.float32),     # (32, 128)
            jax.ShapeDtypeStruct((n * h2, w2 * c2), jnp.float32),   # (16, 128)
        ),
        grid_spec=pltpu.PrefetchScalarGridSpec(
            num_scalar_prefetch=0,
            grid=(1,),                        # whole problem is one VMEM-resident block
            in_specs=[
                pl.BlockSpec((n * h, k1), lambda i: (0, 0)),
                pl.BlockSpec(t1cat.shape, lambda i: (0, 0)),
                pl.BlockSpec(t2cat.shape, lambda i: (0, 0)),
                pl.BlockSpec(b1row.shape, lambda i: (0, 0)),
                pl.BlockSpec(b2row.shape, lambda i: (0, 0)),
            ],
            out_specs=[
                pl.BlockSpec((n * h, w * c1), lambda i: (0, 0)),
                pl.BlockSpec((n * h2, w2 * c2), lambda i: (0, 0)),
            ],
        ),
        compiler_params=pltpu.CompilerParams(
            # Single grid step: nothing for megacore to shard at this size.
            # (On v7x at larger N/H/W, switch to grid=(N,) "parallel" per image.)
            dimension_semantics=("arbitrary",),
        ),
    )(x1, t1cat, t2cat, b1row, b2row)

    # Un-permute layer-1 rows back to natural order: [n][parity][i2] -> [n][i].
    f1_nhwc = (out1.reshape(n, 2, h2, w, c1)
                   .transpose(0, 2, 1, 3, 4)
                   .reshape(n, h, w, c1))
    f2_nhwc = out2.reshape(n, h2, w2, c2)
    return f1_nhwc, f2_nhwc


# --------------------------- feature-extractor class -------------------------- #
class TorchFXFeatureExtractorPallas:
    """Pallas analogue of TorchFXFeatureExtractor over a synthetic 2-stage backbone.

    layer1: conv3x3 s1 p1, Cin=4 ->  8, ReLU   -> (N,  8, 16, 16)
    layer2: conv3x3 s2 p1,    8 -> 16, ReLU    -> (N, 16,  8,  8)
    """

    def __init__(self, params, image_hw=(16, 16)):
        self.return_nodes = ["layer1", "layer2"]
        h, w = image_hw
        w1 = np.asarray(params["w1"], np.float32)   # OIHW
        w2 = np.asarray(params["w2"], np.float32)
        b1 = np.asarray(params["b1"], np.float32)
        b2 = np.asarray(params["b2"], np.float32)
        w_out2 = (w - 1) // 2 + 1

        # Fuse the 3 kernel-row Toeplitz blocks along K (matches the kernel's
        # [di=0, di=1, di=2] window concat).  Layer-1 operands cross HBM -> bf16
        # (f32 accumulation); layer-2 operands are VMEM-resident -> keep f32.
        t1 = _build_row_toeplitz(w1, w, w, 1, 1)          # (3, w*cin,  w*c1)
        t2 = _build_row_toeplitz(w2, w, w_out2, 2, 1)     # (3, w*c1,   w2*c2)
        self.t1cat = jnp.asarray(t1.reshape(-1, t1.shape[2]), jnp.bfloat16)
        self.t2cat = jnp.asarray(t2.reshape(-1, t2.shape[2]), jnp.float32)
        # Biases pre-tiled to the lane-dense output layouts (one row each).
        self.b1row = jnp.asarray(np.tile(b1, w)[None, :], jnp.float32)
        self.b2row = jnp.asarray(np.tile(b2, w_out2)[None, :], jnp.float32)

        self._forward = jax.jit(_fused_two_layer_forward)

    def __call__(self, x_nchw):
        f1_nhwc, f2_nhwc = self._forward(x_nchw, self.t1cat, self.t2cat,
                                         self.b1row, self.b2row)
        # NHWC internally; emit NCHW only at the API boundary to keep the
        # PyTorch-module return convention (dict of node_name -> activation).
        return {
            "layer1": jnp.transpose(f1_nhwc, (0, 3, 1, 2)),
            "layer2": jnp.transpose(f2_nhwc, (0, 3, 1, 2)),
        }


# ---------------------------------- reference --------------------------------- #
def _ref_conv_relu(x_nchw, w, b, stride, pad):
    y = jax.lax.conv_general_dilated(
        x_nchw, w, (stride, stride), ((pad, pad), (pad, pad)),
        dimension_numbers=("NCHW", "OIHW", "NCHW"),
        precision=jax.lax.Precision.HIGHEST,
    )
    return jnp.maximum(y + b[None, :, None, None], 0.0)


if __name__ == "__main__":
    key = jax.random.PRNGKey(0)
    k_x, k_w1, k_b1, k_w2, k_b2 = jax.random.split(key, 5)

    N, C, H, W = 2, 4, 16, 16
    C1, C2 = 8, 16

    x = jax.random.normal(k_x, (N, C, H, W), dtype=jnp.float32)
    params = {
        "w1": 0.1 * jax.random.normal(k_w1, (C1, C, 3, 3), dtype=jnp.float32),
        "b1": 0.1 * jax.random.normal(k_b1, (C1,), dtype=jnp.float32),
        "w2": 0.1 * jax.random.normal(k_w2, (C2, C1, 3, 3), dtype=jnp.float32),
        "b2": 0.1 * jax.random.normal(k_b2, (C2,), dtype=jnp.float32),
    }

    extractor = TorchFXFeatureExtractorPallas(params, image_hw=(H, W))
    feats = extractor(x)
    jax.block_until_ready(feats)

    # Reference mirrors the kernel's layer-1 bf16 MXU feed (operands rounded to bf16,
    # f32 accumulation on both sides); layer 2 is plain f32 on both sides.
    xq = x.astype(jnp.bfloat16).astype(jnp.float32)
    w1q = params["w1"].astype(jnp.bfloat16).astype(jnp.float32)
    ref1 = _ref_conv_relu(xq, w1q, params["b1"], 1, 1)
    ref2 = _ref_conv_relu(ref1, params["w2"], params["b2"], 2, 1)

    assert feats["layer1"].shape == (N, C1, H, W)
    assert feats["layer2"].shape == (N, C2, H // 2, W // 2)
    np.testing.assert_allclose(np.asarray(feats["layer1"]), np.asarray(ref1),
                               rtol=1e-3, atol=1e-4)
    np.testing.assert_allclose(np.asarray(feats["layer2"]), np.asarray(ref2),
                               rtol=2e-3, atol=5e-4)

    print("KERNEL_OK")
</pallas_src>

<mosaic_0001>
module attributes {stable_mosaic.version = 11 : i64} {
  func.func @kernel(%arg0: i32, %arg1: memref<32x192xbf16, #tpu.memory_space<vmem>>, %arg2: memref<192x128xbf16, #tpu.memory_space<vmem>>, %arg3: memref<384x128xf32, #tpu.memory_space<vmem>>, %arg4: memref<1x128xf32, #tpu.memory_space<vmem>>, %arg5: memref<1x128xf32, #tpu.memory_space<vmem>>, %arg6: memref<32x128xf32, #tpu.memory_space<vmem>>, %arg7: memref<16x128xf32, #tpu.memory_space<vmem>>) attributes {dimension_semantics = [#tpu.dimension_semantics<arbitrary>], iteration_bounds = array<i64: 1>, scalar_prefetch = 0 : i64, scratch_operands = 0 : i64, tpu.core_type = #tpu.core_type<tc>, window_params = [{pipeline_mode = #tpu.pipeline_mode<synchronous>, transform_indices = @transform_0, window_bounds = array<i64: 32, 192>}, {pipeline_mode = #tpu.pipeline_mode<synchronous>, transform_indices = @transform_1, window_bounds = array<i64: 192, 128>}, {pipeline_mode = #tpu.pipeline_mode<synchronous>, transform_indices = @transform_2, window_bounds = array<i64: 384, 128>}, {pipeline_mode = #tpu.pipeline_mode<synchronous>, transform_indices = @transform_3, window_bounds = array<i64: 1, 128>}, {pipeline_mode = #tpu.pipeline_mode<synchronous>, transform_indices = @transform_4, window_bounds = array<i64: 1, 128>}, {pipeline_mode = #tpu.pipeline_mode<synchronous>, transform_indices = @transform_5, window_bounds = array<i64: 32, 128>}, {pipeline_mode = #tpu.pipeline_mode<synchronous>, transform_indices = @transform_6, window_bounds = array<i64: 16, 128>}]} {
    %c0 = arith.constant 0 : index
    %c0_0 = arith.constant 0 : index
    %0 = vector.load %arg1[%c0, %c0_0] : memref<32x192xbf16, #tpu.memory_space<vmem>>, vector<32x192xbf16>
    %c0_1 = arith.constant 0 : index
    %c0_2 = arith.constant 0 : index
    %1 = vector.load %arg2[%c0_1, %c0_2] : memref<192x128xbf16, #tpu.memory_space<vmem>>, vector<192x128xbf16>
    %cst = arith.constant dense<0.000000e+00> : vector<32x128xf32>
    %2 = tpu.matmul %0, %1, %cst {dimension_numbers = #tpu.dot_dimension_numbers<[1], [0], [0], [1], [0, 0, 1, 1], [], []>} : vector<32x192xbf16>, vector<192x128xbf16>, vector<32x128xf32> -> vector<32x128xf32>
    %c0_3 = arith.constant 0 : index
    %c0_4 = arith.constant 0 : index
    %3 = vector.load %arg4[%c0_3, %c0_4] : memref<1x128xf32, #tpu.memory_space<vmem>>, vector<1x128xf32>
    %4 = vector.broadcast %3 : vector<1x128xf32> to vector<32x128xf32>
    %5 = arith.addf %2, %4 : vector<32x128xf32>
    %cst_5 = arith.constant 0.000000e+00 : f32
    %6 = vector.broadcast %cst_5 : f32 to vector<32x128xf32>
    %7 = arith.maximumf %5, %6 : vector<32x128xf32>
    %c0_6 = arith.constant 0 : index
    %c0_7 = arith.constant 0 : index
    %8 = vector.load %arg6[%c0_6, %c0_7] : memref<32x128xf32, #tpu.memory_space<vmem>>, vector<32x128xf32>
    tpu.vector_store %arg6[%c0_6, %c0_7], %7 {strides = array<i32>} : memref<32x128xf32, #tpu.memory_space<vmem>>, vector<32x128xf32>,
    %cst_8 = arith.constant 0.000000e+00 : f32
    %9 = vector.broadcast %cst_8 : f32 to vector<1x128xf32>
    %10 = vector.extract_strided_slice %7 {offsets = [0, 0], sizes = [8, 128], strides = [1, 1]} : vector<32x128xf32> to vector<8x128xf32>
    %11 = vector.extract_strided_slice %7 {offsets = [8, 0], sizes = [8, 128], strides = [1, 1]} : vector<32x128xf32> to vector<8x128xf32>
    %12 = vector.extract_strided_slice %11 {offsets = [0, 0], sizes = [7, 128], strides = [1, 1]} : vector<8x128xf32> to vector<7x128xf32>
    %13 = tpu.concatenate %9, %12 in 0 : vector<1x128xf32>, vector<7x128xf32> -> vector<8x128xf32>
    %14 = tpu.concatenate %13, %10, %11 in 1 : vector<8x128xf32>, vector<8x128xf32>, vector<8x128xf32> -> vector<8x384xf32>
    %15 = vector.extract_strided_slice %7 {offsets = [16, 0], sizes = [8, 128], strides = [1, 1]} : vector<32x128xf32> to vector<8x128xf32>
    %16 = vector.extract_strided_slice %7 {offsets = [24, 0], sizes = [8, 128], strides = [1, 1]} : vector<32x128xf32> to vector<8x128xf32>
    %17 = vector.extract_strided_slice %16 {offsets = [0, 0], sizes = [7, 128], strides = [1, 1]} : vector<8x128xf32> to vector<7x128xf32>
    %18 = tpu.concatenate %9, %17 in 0 : vector<1x128xf32>, vector<7x128xf32> -> vector<8x128xf32>
    %19 = tpu.concatenate %18, %15, %16 in 1 : vector<8x128xf32>, vector<8x128xf32>, vector<8x128xf32> -> vector<8x384xf32>
    %20 = tpu.concatenate %14, %19 in 0 : vector<8x384xf32>, vector<8x384xf32> -> vector<16x384xf32>
    %c0_9 = arith.constant 0 : index
    %c0_10 = arith.constant 0 : index
    %21 = vector.load %arg3[%c0_9, %c0_10] : memref<384x128xf32, #tpu.memory_space<vmem>>, vector<384x128xf32>
    %cst_11 = arith.constant dense<0.000000e+00> : vector<16x128xf32>
    %22 = tpu.matmul %20, %21, %cst_11 {dimension_numbers = #tpu.dot_dimension_numbers<[1], [0], [0], [1], [0, 0, 1, 1], [], []>} : vector<16x384xf32>, vector<384x128xf32>, vector<16x128xf32> -> vector<16x128xf32>
    %c0_12 = arith.constant 0 : index
    %c0_13 = arith.constant 0 : index
    %23 = vector.load %arg5[%c0_12, %c0_13] : memref<1x128xf32, #tpu.memory_space<vmem>>, vector<1x128xf32>
    %24 = vector.broadcast %23 : vector<1x128xf32> to vector<16x128xf32>
    %25 = arith.addf %22, %24 : vector<16x128xf32>
    %cst_14 = arith.constant 0.000000e+00 : f32
    %26 = vector.broadcast %cst_14 : f32 to vector<16x128xf32>
    %27 = arith.maximumf %25, %26 : vector<16x128xf32>
    %c0_15 = arith.constant 0 : index
    %c0_16 = arith.constant 0 : index
    %28 = vector.load %arg7[%c0_15, %c0_16] : memref<16x128xf32, #tpu.memory_space<vmem>>, vector<16x128xf32>
    tpu.vector_store %arg7[%c0_15, %c0_16], %27 {strides = array<i32>} : memref<16x128xf32, #tpu.memory_space<vmem>>, vector<16x128xf32>,
    return
  }
  func.func @transform_0(%arg0: i32) -> (i32, i32) {
    %c0_i32 = arith.constant 0 : i32
    %c0_i32_0 = arith.constant 0 : i32
    %c0_i32_1 = arith.constant 0 : i32
    return %c0_i32, %c0_i32_0 : i32, i32
  }
  func.func @transform_1(%arg0: i32) -> (i32, i32) {
    %c0_i32 = arith.constant 0 : i32
    %c0_i32_0 = arith.constant 0 : i32
    %c0_i32_1 = arith.constant 0 : i32
    return %c0_i32, %c0_i32_0 : i32, i32
  }
  func.func @transform_2(%arg0: i32) -> (i32, i32) {
    %c0_i32 = arith.constant 0 : i32
    %c0_i32_0 = arith.constant 0 : i32
    %c0_i32_1 = arith.constant 0 : i32
    return %c0_i32, %c0_i32_0 : i32, i32
  }
  func.func @transform_3(%arg0: i32) -> (i32, i32) {
    %c0_i32 = arith.constant 0 : i32
    %c0_i32_0 = arith.constant 0 : i32
    %c0_i32_1 = arith.constant 0 : i32
    return %c0_i32, %c0_i32_0 : i32, i32
  }
  func.func @transform_4(%arg0: i32) -> (i32, i32) {
    %c0_i32 = arith.constant 0 : i32
    %c0_i32_0 = arith.constant 0 : i32
    %c0_i32_1 = arith.constant 0 : i32
    return %c0_i32, %c0_i32_0 : i32, i32
  }
  func.func @transform_5(%arg0: i32) -> (i32, i32) {
    %c0_i32 = arith.constant 0 : i32
    %c0_i32_0 = arith.constant 0 : i32
    %c0_i32_1 = arith.constant 0 : i32
    return %c0_i32, %c0_i32_0 : i32, i32
  }
  func.func @transform_6(%arg0: i32) -> (i32, i32) {
    %c0_i32 = arith.constant 0 : i32
    %c0_i32_0 = arith.constant 0 : i32
    %c0_i32_1 = arith.constant 0 : i32
    return %c0_i32, %c0_i32_0 : i32, i32
  }
}

</mosaic_0001>

<bundles_post_ra>
// kernel: _fused_two_layer_forward.1
= control target key start
LH: loop header
LB: loop body
LE: loop exit
PB: predicated region body
PF: predicated region fallthrough
CT: control target
= control target key end

     0   :  { %v636_v0 = vmov 0   ;;  %vm148_vm0 = vcmask 523264   ;;  %vm215_vm1 = vcmask 1040384   ;;  %s910_s1 = inlined_call_operand.vmem [shape: bf16[192,128], index: 1, kind: input, shape index: {}]   ;;  %s911_s0 = inlined_call_operand.vmem [shape: bf16[32,192], index: 0, kind: input, shape index: {}]   ;;  %s912_s2 = inlined_call_operand.vmem [shape: f32[384,128], index: 2, kind: input, shape index: {}]   ;;  %s913_s3 = inlined_call_operand.vmem [shape: f32[1,128], index: 3, kind: input, shape index: {}]   ;;  %s914_s5 = inlined_call_operand.vmem [shape: f32[32,128], index: 5, kind: output, shape index: {0}]   ;;  %s915_s4 = inlined_call_operand.vmem [shape: f32[1,128], index: 4, kind: input, shape index: {}]   ;;  %s916_s6 = inlined_call_operand.vmem [shape: f32[16,128], index: 6, kind: output, shape index: {1}]  }
   0x1   :  { %155 = vmatprep.subr.bf16.mxu0 %v636_v0  ;;  %v618_v1 = vld [vmem:[%s910_s1] sm:$0xff]   ;;  %v619_v2 = vld [vmem:[%s910_s1 + $0x8] sm:$0xff]   ;;  %v620_v3 = vld [vmem:[%s910_s1 + $0x10] sm:$0xff]  }
   0x2   :  { %156 = vmatpush1.bf16.msra.mxu0 %v618_v1  ;;  %v621_v4 = vld [vmem:[%s910_s1 + $0x18] sm:$0xff]   ;;  %v632_v5 = vld [vmem:[%s911_s0 + $0x4] ss:$8 sps:$4 sm:$0xff]   ;;  %v239_v13 = vld [vmem:[%s912_s2 + $0x90] sm:$0xff] }
   0x3   :  { %157 = vmatprep.subr.bf16.mxu0 %v636_v0  ;;  %v622_v6 = vld [vmem:[%s910_s1 + $0x20] sm:$0xff]   ;;  %455 = vmatprep.mubr.msk.bf16.mxu0 %vm148_vm0, %v632_v5  ;;  %v238_v8 = vld [vmem:[%s912_s2 + $0x88] sm:$0xff]  ;;  %v240_v14 = vld [vmem:[%s912_s2 + $0x98] sm:$0xff] }
   0x4   :  { %v237_v7 = vld [vmem:[%s912_s2 + $0x80] sm:$0xff]  ;;  %v222_v10 = vld [vmem:[%s912_s2 + $0x8] sm:$0xff]  ;;  %v223_v15 = vld [vmem:[%s912_s2 + $0x10] sm:$0xff]  ;;  %v557_v16 = vpack.c.bf16 %v240_v14, %v239_v13 }
   0x5   :  { %v221_v9 = vld [vmem:[%s912_s2] sm:$0xff]  ;;  %v553_v11 = vpack.c.bf16 %v238_v8, %v237_v7  ;;  %v224_v17 = vld [vmem:[%s912_s2 + $0x18] sm:$0xff]  ;;  %v242_v19 = vld [vmem:[%s912_s2 + $0xa8] sm:$0xff] }
   0x6   :  { %158 = vmatpush1.bf16.msra.mxu0 %v619_v2  ;;  %v555_v12 = vpack.c.bf16 %v222_v10, %v221_v9  ;;  %v241_v18 = vld [vmem:[%s912_s2 + $0xa0] sm:$0xff]  ;;  %v623_v20 = vld [vmem:[%s910_s1 + $0x28] sm:$0xff]   ;;  %v559_v21 = vpack.c.bf16 %v224_v17, %v223_v15  ;;  %v243_v25 = vld [vmem:[%s912_s2 + $0xb0] sm:$0xff] }
   0x7   :  { %159 = vmatprep.subr.bf16.mxu0 %v636_v0  ;;  %554 = vmatprep.subr.bf16.mxu1 %v553_v11  ;;  %v561_v22 = vpack.c.bf16 %v242_v19, %v241_v18  ;;  %v225_v23 = vld [vmem:[%s912_s2 + $0x20] sm:$0xff]  ;;  %v226_v24 = vld [vmem:[%s912_s2 + $0x28] sm:$0xff]  ;;  %v244_v26 = vld [vmem:[%s912_s2 + $0xb8] sm:$0xff] }
   0x8   :  { %556 = vmatpush3.bf16.msra.mxu1 %v555_v12  ;;  %v624_v27 = vld [vmem:[%s910_s1 + $0x30] sm:$0xff]   ;;  %v563_v28 = vpack.c.bf16 %v226_v24, %v225_v23  ;;  %v565_v29 = vpack.c.bf16 %v244_v26, %v243_v25  ;;  %v228_v31 = vld [vmem:[%s912_s2 + $0x38] sm:$0xff]  ;;  %v245_v32 = vld [vmem:[%s912_s2 + $0xc0] sm:$0xff] }
   0x9   :  { %558 = vmatprep.subr.bf16.mxu1 %v557_v16  ;;  %v227_v30 = vld [vmem:[%s912_s2 + $0x30] sm:$0xff]  ;;  %v246_v33 = vld [vmem:[%s912_s2 + $0xc8] sm:$0xff]  ;;  %v625_v34 = vld [vmem:[%s910_s1 + $0x38] sm:$0xff]  }
   0xa   :  { %160 = vmatpush1.bf16.msra.mxu0 %v620_v3  ;;  %v567_v35 = vpack.c.bf16 %v228_v31, %v227_v30  ;;  %v569_v36 = vpack.c.bf16 %v246_v33, %v245_v32  ;;  %v229_v37 = vld [vmem:[%s912_s2 + $0x40] sm:$0xff]  ;;  %v230_v38 = vld [vmem:[%s912_s2 + $0x48] sm:$0xff]  ;;  %v247_v39 = vld [vmem:[%s912_s2 + $0xd0] sm:$0xff] }
   0xb   :  { %161 = vmatprep.subr.bf16.mxu0 %v636_v0  ;;  %v248_v40 = vld [vmem:[%s912_s2 + $0xd8] sm:$0xff]  ;;  %v626_v41 = vld [vmem:[%s910_s1 + $0x40] sm:$0xff]   ;;  %v571_v42 = vpack.c.bf16 %v230_v38, %v229_v37  ;;  %v231_v44 = vld [vmem:[%s912_s2 + $0x50] sm:$0xff] }
   0xc   :  { %560 = vmatpush3.bf16.msra.mxu1 %v559_v21  ;;  %v573_v43 = vpack.c.bf16 %v248_v40, %v247_v39  ;;  %v232_v45 = vld [vmem:[%s912_s2 + $0x58] sm:$0xff]  ;;  %v627_v46 = vld [vmem:[%s910_s1 + $0x48] sm:$0xff]   ;;  %v628_v48 = vld [vmem:[%s910_s1 + $0x50] sm:$0xff]  }
   0xd   :  { %562 = vmatprep.subr.bf16.mxu1 %v561_v22  ;;  %v575_v47 = vpack.c.bf16 %v232_v45, %v231_v44  ;;  %v629_v49 = vld [vmem:[%s910_s1 + $0x58] sm:$0xff]   ;;  %v630_v50 = vld [vmem:[%s911_s0] ss:$8 sps:$4 sm:$0xff]   ;;  %v251_v59 = vld [vmem:[%s912_s2 + $0xf0] sm:$0xff] }
   0xe   :  { %162 = vmatpush1.bf16.msra.mxu0 %v621_v4  ;;  %v633_v51 = vld [vmem:[%s911_s0 + $0x14] ss:$8 sps:$4 sm:$0xff]   ;;  %v635_v52 = vld [vmem:[%s911_s0 + $0x10] ss:$8 sps:$4 sm:$0xff]   ;;  %v249_v53 = vld [vmem:[%s912_s2 + $0xe0] sm:$0xff] }
   0xf   :  { %163 = vmatprep.subr.bf16.mxu0 %v636_v0  ;;  %v250_v54 = vld [vmem:[%s912_s2 + $0xe8] sm:$0xff]  ;;  %v233_v56 = vld [vmem:[%s912_s2 + $0x60] sm:$0xff]  ;;  %v252_v60 = vld [vmem:[%s912_s2 + $0xf8] sm:$0xff] }
  0x10   :  { %564 = vmatpush3.bf16.msra.mxu1 %v563_v28  ;;  %v577_v55 = vpack.c.bf16 %v250_v54, %v249_v53  ;;  %v234_v57 = vld [vmem:[%s912_s2 + $0x68] sm:$0xff]  ;;  %v581_v61 = vpack.c.bf16 %v252_v60, %v251_v59  ;;  %v235_v62 = vld [vmem:[%s912_s2 + $0x70] sm:$0xff]  ;;  %v236_v63 = vld [vmem:[%s912_s2 + $0x78] sm:$0xff] }
  0x11   :  { %566 = vmatprep.subr.bf16.mxu1 %v565_v29  ;;  %v579_v58 = vpack.c.bf16 %v234_v57, %v233_v56  ;;  %v253_v1 = vld [vmem:[%s912_s2 + $0x100] sm:$0xff]  ;;  %v254_v2 = vld [vmem:[%s912_s2 + $0x108] sm:$0xff]  ;;  %v255_v12 = vld [vmem:[%s912_s2 + $0x110] sm:$0xff] }
  0x12   :  { %164 = vmatpush1.bf16.msra.mxu0 %v622_v6  ;;  %v585_v3 = vpack.c.bf16 %v254_v2, %v253_v1  ;;  %v438_v4 = vld [vmem:[%s913_s3] ss:$0 sm:$0xff]  ;;  %v256_v13 = vld [vmem:[%s912_s2 + $0x118] sm:$0xff]  ;;  %vm848_vm2 = vmneg %vm215_vm1 }
  0x13   :  { %165 = vmatprep.subr.bf16.mxu0 %v636_v0  ;;  %v589_v17 = vpack.c.bf16 %v256_v13, %v255_v12  ;;  %v257_v19 = vld [vmem:[%s912_s2 + $0x120] sm:$0xff]  ;;  %v259_v28 = vld [vmem:[%s912_s2 + $0x130] sm:$0xff]  ;;  %v260_v29 = vld [vmem:[%s912_s2 + $0x138] sm:$0xff] }
  0x14   :  { %568 = vmatpush3.bf16.msra.mxu1 %v567_v35  ;;  %v597_v32 = vpack.c.bf16 %v260_v29, %v259_v28  ;;  %v261_v33 = vld [vmem:[%s912_s2 + $0x140] sm:$0xff]  ;;  %v264_v37 = vld [vmem:[%s912_s2 + $0x158] sm:$0xff]  ;;  %v266_v40 = vld [vmem:[%s912_s2 + $0x168] sm:$0xff] }
  0x15   :  { %570 = vmatprep.subr.bf16.mxu1 %v569_v36  ;;  %v263_v36 = vld [vmem:[%s912_s2 + $0x150] sm:$0xff]  ;;  %v265_v39 = vld [vmem:[%s912_s2 + $0x160] sm:$0xff] }
  0x16   :  { %166 = vmatpush1.bf16.msra.mxu0 %v623_v20  ;;  %v258_v20 = vld [vmem:[%s912_s2 + $0x128] sm:$0xff]  ;;  %v605_v38 = vpack.c.bf16 %v264_v37, %v263_v36 }
  0x17   :  { %167 = vmatprep.subr.bf16.mxu0 %v636_v0  ;;  %v593_v26 = vpack.c.bf16 %v258_v20, %v257_v19 }
  0x18   :  { %572 = vmatpush3.bf16.msra.mxu1 %v571_v42  ;;  %v267_v42 = vld [vmem:[%s912_s2 + $0x170] sm:$0xff] }
  0x19   :  { %574 = vmatprep.subr.bf16.mxu1 %v573_v43  ;;  %v268_v43 = vld [vmem:[%s912_s2 + $0x178] sm:$0xff] }
  0x1a   :  { %168 = vmatpush1.bf16.msra.mxu0 %v624_v27  ;;  %v613_v44 = vpack.c.bf16 %v268_v43, %v267_v42 }
  0x1b   :  { %169 = vmatprep.subr.bf16.mxu0 %v636_v0 }
  0x1c   :  { %576 = vmatpush3.bf16.msra.mxu1 %v575_v47 }
  0x1d   :  { %578 = vmatprep.subr.bf16.mxu1 %v577_v55 }
  0x1e   :  { %170 = vmatpush1.bf16.msra.mxu0 %v625_v34  ;;  %v262_v34 = vld [vmem:[%s912_s2 + $0x148] sm:$0xff] }
  0x1f   :  { %171 = vmatprep.subr.bf16.mxu0 %v636_v0  ;;  %v601_v35 = vpack.c.bf16 %v262_v34, %v261_v33 }
  0x20   :  { %580 = vmatpush3.bf16.msra.mxu1 %v579_v58 }
  0x21   :  { %582 = vmatprep.subr.bf16.mxu1 %v581_v61 }
  0x22   :  { %172 = vmatpush1.bf16.msra.mxu0 %v626_v41  ;;  %v609_v41 = vpack.c.bf16 %v266_v40, %v265_v39 }
  0x23   :  { %173 = vmatprep.subr.bf16.mxu0 %v636_v0 }
  0x26   :  { %174 = vmatpush1.bf16.msra.mxu0 %v627_v46 }
  0x27   :  { %175 = vmatprep.subr.bf16.mxu0 %v636_v0 }
  0x2a   :  { %176 = vmatpush1.bf16.msra.mxu0 %v628_v48 }
  0x2b   :  { %177 = vmatprep.subr.bf16.mxu0 %v636_v0  ;;  %v583_v0 = vpack.c.bf16 %v236_v63, %v235_v62 }
  0x2d   :  { %584 = vmatpush3.bf16.msra.mxu1 %v583_v0 }
  0x2e   :  { %178 = vmatpush1.bf16.msra.mxu0 %v629_v49  ;;  %586 = vmatprep.subr.bf16.mxu1 %v585_v3 }
  0x31   :  { %188 = vmatmul.mubr.bf16.vlgmr.msra.gmra.mrb[0].mxu0 %v630_v50 }
  0x32   :  { %456 = vmatprep.mubr.msk.bf16.mxu0 %vm148_vm0, %v633_v51  ;;  %v457_v51 = vld [vmem:[%s915_s4] ss:$0 sm:$0xff] }
  0x39   :  { %196 = vmatmul.mubr.bf16.gmra.mrb[4].mxu0 %v635_v52 }
 0x104   :  { %v189_v5 = vpop.f32.mrb[0].mxu0 }
 0x105   :  { %v190_v6 = vadd.f32 %v438_v4, %v189_v5  ;;  %v191_v7 = vpop.f32.mrb[1].mxu0 }
 0x106   :  { %v192_v8 = vpop.f32.mrb[2].mxu0 }
 0x107   :  { %v204_v9 = vmax.f32 %v190_v6, 0.0  ;;  %v193_v10 = vadd.f32 %v438_v4, %v192_v8  ;;  %v194_v11 = vpop.f32.mrb[3].mxu0 }
 0x109   :  { %208 = vst [vmem:[%s914_s5] sm:$0xff] %v204_v9  ;;  %v205_v14 = vmax.f32 %v193_v10, 0.0  ;;  %340 = vmatprep.mubr.f32.mxu1 %v204_v9 }
 0x10b   :  { %209 = vst [vmem:[%s914_s5 + $0x8] sm:$0xff] %v205_v14  ;;  %v213_v16 = vrot.slane %v205_v14, 7 }
 0x10c   :  { %v197_v18 = vpop.f32.mrb[4].mxu0 }
 0x10d   :  { %v198_v21 = vadd.f32 %v438_v4, %v197_v18  ;;  %v199_v22 = vpop.f32.mrb[5].mxu0  ;;  %459 = vmatmul.mubr.msk.f32.vlgmr.msra.gmra.mrb[0].mxu1 %vm848_vm2, %v213_v16 }
 0x10e   :  { %588 = vmatpush3.bf16.msra.mxu1 %v585_v3  ;;  %v200_v23 = vpop.f32.mrb[6].mxu0 }
 0x10f   :  { %v206_v24 = vmax.f32 %v198_v21, 0.0  ;;  %v201_v25 = vadd.f32 %v438_v4, %v200_v23  ;;  %590 = vmatprep.subr.bf16.mxu1 %v589_v17  ;;  %v202_v27 = vpop.f32.mrb[7].mxu0 }
 0x111   :  { %210 = vst [vmem:[%s914_s5 + $0x10] sm:$0xff] %v206_v24  ;;  %v207_v30 = vmax.f32 %v201_v25, 0.0  ;;  %345 = vmatprep.mubr.f32.mxu1 %v206_v24 }
 0x112   :  { %592 = vmatpush3.bf16.msra.mxu1 %v589_v17 }
 0x113   :  { %211 = vst [vmem:[%s914_s5 + $0x18] sm:$0xff] %v207_v30  ;;  %v218_v31 = vrot.slane %v207_v30, 7  ;;  %594 = vmatprep.subr.bf16.mxu1 %v593_v26 }
 0x115   :  { %461 = vmatmul.mubr.msk.f32.gmra.mrb[2].mxu1 %vm848_vm2, %v218_v31 }
 0x116   :  { %596 = vmatpush3.bf16.msra.mxu1 %v593_v26  ;;  %550 = vmatprep.mubr.f32.mxu1 %v205_v14 }
 0x117   :  { %598 = vmatprep.subr.bf16.mxu1 %v597_v32 }
 0x11a   :  { %600 = vmatpush3.bf16.msra.mxu1 %v597_v32 }
 0x11b   :  { %602 = vmatprep.subr.bf16.mxu1 %v601_v35 }
 0x11e   :  { %604 = vmatpush3.bf16.msra.mxu1 %v601_v35 }
 0x11f   :  { %606 = vmatprep.subr.bf16.mxu1 %v605_v38 }
 0x122   :  { %608 = vmatpush3.bf16.msra.mxu1 %v605_v38 }
 0x123   :  { %610 = vmatprep.subr.bf16.mxu1 %v609_v41 }
 0x126   :  { %612 = vmatpush3.bf16.msra.mxu1 %v609_v41 }
 0x127   :  { %614 = vmatprep.subr.bf16.mxu1 %v613_v44 }
 0x12a   :  { %616 = vmatpush3.bf16.msra.mxu1 %v613_v44 }
 0x12d   :  { %551 = vmatmul.mubr.f32.vlgmr.msra.gmra.mrb[4].mxu1 %v207_v30 }
 0x1e0   :  { %v494_v45 = vpop.f32.mrb[0].mxu1 }
 0x1e1   :  { %v495_v46 = vpop.f32.mrb[1].mxu1 }
 0x1e2   :  { %v496_v47 = vadd.f32 %v495_v46, %v494_v45 }
 0x1e4   :  { %v343_v54 = vadd.f32 %v496_v47, %v457_v51 }
 0x1e8   :  { %v497_v48 = vpop.f32.mrb[2].mxu1 }
 0x1e9   :  { %v498_v49 = vpop.f32.mrb[3].mxu1 }
 0x1ea   :  { %v499_v50 = vadd.f32 %v498_v49, %v497_v48 }
 0x1ec   :  { %v348_v52 = vadd.f32 %v499_v50, %v457_v51 }
 0x200   :  { %v552_v53 = vpop.f32.mrb[4].mxu1 }
 0x201   :  { %v423_v55 = vadd.f32 %v552_v53, %v348_v52  ;;  %v417_v56 = vpop.f32.mrb[5].mxu1 }
 0x202   :  { %v418_v57 = vadd.f32 %v417_v56, %v343_v54 }
 0x203   :  { %v427_v58 = vmax.f32 %v423_v55, 0.0 }
 0x204   :  { %v426_v59 = vmax.f32 %v418_v57, 0.0 }
 0x205   :  { %429 = vst [vmem:[%s916_s6 + $0x8] sm:$0xff] %v427_v58 }
 0x206   :  { %428 = vst [vmem:[%s916_s6] sm:$0xff] %v426_v59 }

</bundles_post_ra>
